<compile_context>
chip_gen: v5e
topology: v5e:2x2
jax: 0.10.0
libtpu: 0.0.40
codegen_flags: <defaults>
</compile_context>

<pallas_src>
import jax
import jax.numpy as jnp
from jax import lax
from jax.experimental import pallas as pl
from jax.experimental.pallas import tpu as pltpu


def critic_kernel(x_ref,
                  w1_ref, b1_ref,
                  w2_ref, b2_ref,
                  w3_ref, b3_ref,
                  w4_ref, b4_ref,
                  o_ref):
    # x_ref: (TILE_B, S) in natural layout.  Weights in PyTorch layout
    # (out_features, in_features); biases are (out_features, 1) f32 columns.
    cd = w1_ref.dtype
    x = x_ref[...].astype(cd)  # in-register cast (no extra HBM pass)

    # Layer 1: contract the shared feature axis of w1 (256, S) and x (TILE_B, S)
    # -> (256, TILE_B).  Batch lands on the lane axis for the rest of the net.
    h = lax.dot_general(w1_ref[...], x,
                        dimension_numbers=(((1,), (1,)), ((), ())),
                        preferred_element_type=jnp.float32)
    h = jnp.maximum(h + b1_ref[...], 0.0)

    # Layer 2: (128, 256) @ (256, TILE_B) -> (128, TILE_B)
    h = jnp.dot(w2_ref[...], h.astype(cd), preferred_element_type=jnp.float32)
    h = jnp.maximum(h + b2_ref[...], 0.0)

    # Layer 3: (64, 128) @ (128, TILE_B) -> (64, TILE_B)
    h = jnp.dot(w3_ref[...], h.astype(cd), preferred_element_type=jnp.float32)
    h = jnp.maximum(h + b3_ref[...], 0.0)

    # Layer 4: (1, 64) @ (64, TILE_B) -> (1, TILE_B)  — lane-dense output store.
    out = jnp.dot(w4_ref[...], h.astype(cd), preferred_element_type=jnp.float32)
    o_ref[...] = (out + b4_ref[0, 0]).astype(o_ref.dtype)


def _round_up(x, m):
    return (x + m - 1) // m * m


def critic_forward(x, params, *, tile_b=1024):
    """x: (B, num_states) f32 (natural layout, no pre-padding needed).
    params: PyTorch-layout weights (already in the desired compute dtype,
    e.g. via prepare_critic_params) and f32 (out, 1) biases.
    Returns (B, 1) f32."""
    B, S = x.shape

    # Clamp the batch tile: don't pad tiny batches to a huge tile, and keep
    # >= 2 grid tiles when the batch allows it (v7x: shards across both TCs).
    b_ceil = max(128, _round_up(B, 128))
    tile_b = min(tile_b, b_ceil)
    if b_ceil >= 256:
        tile_b = min(tile_b, _round_up(pl.cdiv(b_ceil, 2), 128))
    tile_b = max(tile_b, 128)
    num_tiles = pl.cdiv(B, tile_b)

    w1, b1 = params["w1"], params["b1"]
    w2, b2 = params["w2"], params["b2"]
    w3, b3 = params["w3"], params["b3"]
    w4, b4 = params["w4"], params["b4"]

    args = (x, w1, b1, w2, b2, w3, b3, w4, b4)

    const = lambda i: (0, 0)  # weights/biases: resident, DMA'd once
    in_specs = [
        pl.BlockSpec((tile_b, S), lambda i: (i, 0)),   # x tile, pipelined over batch
        pl.BlockSpec(w1.shape, const),
        pl.BlockSpec(b1.shape, const),
        pl.BlockSpec(w2.shape, const),
        pl.BlockSpec(b2.shape, const),
        pl.BlockSpec(w3.shape, const),
        pl.BlockSpec(b3.shape, const),
        pl.BlockSpec(w4.shape, const),
        pl.BlockSpec(memory_space=pltpu.MemorySpace.SMEM),  # b4: scalar -> SMEM
    ]
    out_specs = pl.BlockSpec((1, tile_b), lambda i: (0, i))

    w_itemsize = jnp.dtype(w1.dtype).itemsize
    x_itemsize = jnp.dtype(x.dtype).itemsize
    flops = 2 * B * (S * 256 + 256 * 128 + 128 * 64 + 64 * 1)
    bytes_accessed = (x.size * x_itemsize
                      + sum(w.size * w_itemsize for w in (w1, w2, w3, w4))
                      + sum(b.size * 4 for b in (b1, b2, b3, b4))
                      + B * 4)
    cost = pl.CostEstimate(flops=int(flops), transcendentals=0,
                           bytes_accessed=int(bytes_accessed))

    out_row = pl.pallas_call(
        critic_kernel,
        out_shape=jax.ShapeDtypeStruct((1, B), jnp.float32),
        grid=(num_tiles,),
        in_specs=in_specs,
        out_specs=out_specs,
        compiler_params=pltpu.CompilerParams(
            dimension_semantics=("parallel",)),
        cost_estimate=cost,
    )(*args)

    return out_row.reshape(B, 1)


def prepare_critic_params(params, compute_dtype=jnp.bfloat16):
    """Cast weights to the MXU compute dtype ONCE (bf16 default on all
    generations); biases stay f32 (added to the f32 accumulator)."""
    out = {}
    for k, v in params.items():
        out[k] = v.astype(compute_dtype) if k.startswith("w") else v
    return out


def init_critic_params(key, num_states):
    """PyTorch nn.Linear default init (U[-1/sqrt(fan_in), 1/sqrt(fan_in)]).
    Weights in PyTorch layout (out_features, in_features); biases (out_features, 1)."""
    dims = [num_states, 256, 128, 64, 1]
    params = {}
    keys = jax.random.split(key, 2 * (len(dims) - 1))
    for i in range(len(dims) - 1):
        fan_in, fan_out = dims[i], dims[i + 1]
        bound = 1.0 / jnp.sqrt(jnp.float32(fan_in))
        params[f"w{i+1}"] = jax.random.uniform(
            keys[2 * i], (fan_out, fan_in), jnp.float32, -bound, bound)
        params[f"b{i+1}"] = jax.random.uniform(
            keys[2 * i + 1], (fan_out, 1), jnp.float32, -bound, bound)
    return params


def critic_reference(x, params):
    h = jnp.maximum(x @ params["w1"].T + params["b1"].T, 0.0)
    h = jnp.maximum(h @ params["w2"].T + params["b2"].T, 0.0)
    h = jnp.maximum(h @ params["w3"].T + params["b3"].T, 0.0)
    return h @ params["w4"].T + params["b4"].T


if __name__ == "__main__":
    key = jax.random.PRNGKey(0)
    k_params, k_x, k_x2 = jax.random.split(key, 3)

    batch = 8
    num_states = 32

    params = init_critic_params(k_params, num_states)
    x = jax.random.normal(k_x, (batch, num_states), jnp.float32)
    ref = critic_reference(x, params)

    # Default path: bf16 MXU compute (weights cast once), f32 accumulation.
    p_bf16 = prepare_critic_params(params)
    out = jax.block_until_ready(critic_forward(x, p_bf16))
    assert out.shape == (batch, 1), out.shape
    assert jnp.allclose(out, ref, atol=1e-1, rtol=1e-1), "bf16 mismatch vs JAX reference"

    # f32 compute path (exact check vs the JAX reference).
    p_f32 = prepare_critic_params(params, compute_dtype=jnp.float32)
    out_f32 = jax.block_until_ready(critic_forward(x, p_f32))
    assert jnp.allclose(out_f32, ref, atol=1e-5, rtol=1e-5), "f32 mismatch vs JAX reference"

    # Multi-tile grid + ragged batch (B=300 -> two tiles of 256, last partial).
    x2 = jax.random.normal(k_x2, (300, num_states), jnp.float32)
    out2 = jax.block_until_ready(critic_forward(x2, p_f32))
    ref2 = critic_reference(x2, params)
    assert out2.shape == (300, 1), out2.shape
    assert jnp.allclose(out2, ref2, atol=1e-5, rtol=1e-5), "multi-tile mismatch"

    print("KERNEL_OK")
</pallas_src>

<mosaic_0001>
module attributes {stable_mosaic.version = 11 : i64} {
  func.func @critic_kernel(%arg0: i32, %arg1: memref<128x32xf32, #tpu.memory_space<vmem>>, %arg2: memref<256x32xbf16, #tpu.memory_space<vmem>>, %arg3: memref<256x1xf32, #tpu.memory_space<vmem>>, %arg4: memref<128x256xbf16, #tpu.memory_space<vmem>>, %arg5: memref<128x1xf32, #tpu.memory_space<vmem>>, %arg6: memref<64x128xbf16, #tpu.memory_space<vmem>>, %arg7: memref<64x1xf32, #tpu.memory_space<vmem>>, %arg8: memref<1x64xbf16, #tpu.memory_space<vmem>>, %arg9: memref<1x1xf32, #tpu.memory_space<smem>>, %arg10: memref<1x128xf32, #tpu.memory_space<vmem>>) attributes {dimension_semantics = [#tpu.dimension_semantics<parallel>], iteration_bounds = array<i64: 1>, scalar_prefetch = 0 : i64, scratch_operands = 0 : i64, tpu.core_type = #tpu.core_type<tc>, window_params = [{transform_indices = @transform_0, window_bounds = array<i64: 128, 32>}, {pipeline_mode = #tpu.pipeline_mode<synchronous>, transform_indices = @transform_1, window_bounds = array<i64: 256, 32>}, {pipeline_mode = #tpu.pipeline_mode<synchronous>, transform_indices = @transform_2, window_bounds = array<i64: 256, 1>}, {pipeline_mode = #tpu.pipeline_mode<synchronous>, transform_indices = @transform_3, window_bounds = array<i64: 128, 256>}, {pipeline_mode = #tpu.pipeline_mode<synchronous>, transform_indices = @transform_4, window_bounds = array<i64: 128, 1>}, {pipeline_mode = #tpu.pipeline_mode<synchronous>, transform_indices = @transform_5, window_bounds = array<i64: 64, 128>}, {pipeline_mode = #tpu.pipeline_mode<synchronous>, transform_indices = @transform_6, window_bounds = array<i64: 64, 1>}, {pipeline_mode = #tpu.pipeline_mode<synchronous>, transform_indices = @transform_7, window_bounds = array<i64: 1, 64>}, {transform_indices = @transform_8, window_bounds = array<i64: 1, 1>}, {transform_indices = @transform_9, window_bounds = array<i64: 1, 128>}]} {
    %c0 = arith.constant 0 : index
    %c0_0 = arith.constant 0 : index
    %0 = vector.load %arg1[%c0, %c0_0] : memref<128x32xf32, #tpu.memory_space<vmem>>, vector<128x32xf32>
    %1 = arith.truncf %0 : vector<128x32xf32> to vector<128x32xbf16>
    %c0_1 = arith.constant 0 : index
    %c0_2 = arith.constant 0 : index
    %2 = vector.load %arg2[%c0_1, %c0_2] : memref<256x32xbf16, #tpu.memory_space<vmem>>, vector<256x32xbf16>
    %cst = arith.constant dense<0.000000e+00> : vector<256x128xf32>
    %3 = tpu.matmul %2, %1, %cst {dimension_numbers = #tpu.dot_dimension_numbers<[1], [1], [0], [0], [0, 0, 1, 0], [], []>} : vector<256x32xbf16>, vector<128x32xbf16>, vector<256x128xf32> -> vector<256x128xf32>
    %c0_3 = arith.constant 0 : index
    %c0_4 = arith.constant 0 : index
    %4 = vector.load %arg3[%c0_3, %c0_4] : memref<256x1xf32, #tpu.memory_space<vmem>>, vector<256x1xf32>
    %5 = vector.broadcast %4 : vector<256x1xf32> to vector<256x128xf32>
    %6 = arith.addf %3, %5 : vector<256x128xf32>
    %cst_5 = arith.constant 0.000000e+00 : f32
    %7 = vector.broadcast %cst_5 : f32 to vector<256x128xf32>
    %8 = arith.maximumf %6, %7 : vector<256x128xf32>
    %c0_6 = arith.constant 0 : index
    %c0_7 = arith.constant 0 : index
    %9 = vector.load %arg4[%c0_6, %c0_7] : memref<128x256xbf16, #tpu.memory_space<vmem>>, vector<128x256xbf16>
    %10 = arith.truncf %8 : vector<256x128xf32> to vector<256x128xbf16>
    %cst_8 = arith.constant dense<0.000000e+00> : vector<128x128xf32>
    %11 = tpu.matmul %9, %10, %cst_8 {dimension_numbers = #tpu.dot_dimension_numbers<[1], [0], [0], [1], [0, 0, 1, 1], [], []>} : vector<128x256xbf16>, vector<256x128xbf16>, vector<128x128xf32> -> vector<128x128xf32>
    %c0_9 = arith.constant 0 : index
    %c0_10 = arith.constant 0 : index
    %12 = vector.load %arg5[%c0_9, %c0_10] : memref<128x1xf32, #tpu.memory_space<vmem>>, vector<128x1xf32>
    %13 = vector.broadcast %12 : vector<128x1xf32> to vector<128x128xf32>
    %14 = arith.addf %11, %13 : vector<128x128xf32>
    %cst_11 = arith.constant 0.000000e+00 : f32
    %15 = vector.broadcast %cst_11 : f32 to vector<128x128xf32>
    %16 = arith.maximumf %14, %15 : vector<128x128xf32>
    %c0_12 = arith.constant 0 : index
    %c0_13 = arith.constant 0 : index
    %17 = vector.load %arg6[%c0_12, %c0_13] : memref<64x128xbf16, #tpu.memory_space<vmem>>, vector<64x128xbf16>
    %18 = arith.truncf %16 : vector<128x128xf32> to vector<128x128xbf16>
    %cst_14 = arith.constant dense<0.000000e+00> : vector<64x128xf32>
    %19 = tpu.matmul %17, %18, %cst_14 {dimension_numbers = #tpu.dot_dimension_numbers<[1], [0], [0], [1], [0, 0, 1, 1], [], []>} : vector<64x128xbf16>, vector<128x128xbf16>, vector<64x128xf32> -> vector<64x128xf32>
    %c0_15 = arith.constant 0 : index
    %c0_16 = arith.constant 0 : index
    %20 = vector.load %arg7[%c0_15, %c0_16] : memref<64x1xf32, #tpu.memory_space<vmem>>, vector<64x1xf32>
    %21 = vector.broadcast %20 : vector<64x1xf32> to vector<64x128xf32>
    %22 = arith.addf %19, %21 : vector<64x128xf32>
    %cst_17 = arith.constant 0.000000e+00 : f32
    %23 = vector.broadcast %cst_17 : f32 to vector<64x128xf32>
    %24 = arith.maximumf %22, %23 : vector<64x128xf32>
    %c0_18 = arith.constant 0 : index
    %c0_19 = arith.constant 0 : index
    %25 = vector.load %arg8[%c0_18, %c0_19] : memref<1x64xbf16, #tpu.memory_space<vmem>>, vector<1x64xbf16>
    %26 = arith.truncf %24 : vector<64x128xf32> to vector<64x128xbf16>
    %cst_20 = arith.constant dense<0.000000e+00> : vector<1x128xf32>
    %27 = tpu.matmul %25, %26, %cst_20 {dimension_numbers = #tpu.dot_dimension_numbers<[1], [0], [0], [1], [0, 0, 1, 1], [], []>} : vector<1x64xbf16>, vector<64x128xbf16>, vector<1x128xf32> -> vector<1x128xf32>
    %c0_21 = arith.constant 0 : index
    %c0_22 = arith.constant 0 : index
    %28 = memref.load %arg9[%c0_21, %c0_22] : memref<1x1xf32, #tpu.memory_space<smem>>
    %29 = vector.broadcast %28 : f32 to vector<1x128xf32>
    %30 = arith.addf %27, %29 : vector<1x128xf32>
    %c0_23 = arith.constant 0 : index
    %c0_24 = arith.constant 0 : index
    %31 = vector.load %arg10[%c0_23, %c0_24] : memref<1x128xf32, #tpu.memory_space<vmem>>, vector<1x128xf32>
    tpu.vector_store %arg10[%c0_23, %c0_24], %30 {strides = array<i32>} : memref<1x128xf32, #tpu.memory_space<vmem>>, vector<1x128xf32>,
    return
  }
  func.func @transform_0(%arg0: i32) -> (i32, i32) {
    %c0_i32 = arith.constant 0 : i32
    %c0_i32_0 = arith.constant 0 : i32
    return %arg0, %c0_i32 : i32, i32
  }
  func.func @transform_1(%arg0: i32) -> (i32, i32) {
    %c0_i32 = arith.constant 0 : i32
    %c0_i32_0 = arith.constant 0 : i32
    %c0_i32_1 = arith.constant 0 : i32
    return %c0_i32, %c0_i32_0 : i32, i32
  }
  func.func @transform_2(%arg0: i32) -> (i32, i32) {
    %c0_i32 = arith.constant 0 : i32
    %c0_i32_0 = arith.constant 0 : i32
    %c0_i32_1 = arith.constant 0 : i32
    return %c0_i32, %c0_i32_0 : i32, i32
  }
  func.func @transform_3(%arg0: i32) -> (i32, i32) {
    %c0_i32 = arith.constant 0 : i32
    %c0_i32_0 = arith.constant 0 : i32
    %c0_i32_1 = arith.constant 0 : i32
    return %c0_i32, %c0_i32_0 : i32, i32
  }
  func.func @transform_4(%arg0: i32) -> (i32, i32) {
    %c0_i32 = arith.constant 0 : i32
    %c0_i32_0 = arith.constant 0 : i32
    %c0_i32_1 = arith.constant 0 : i32
    return %c0_i32, %c0_i32_0 : i32, i32
  }
  func.func @transform_5(%arg0: i32) -> (i32, i32) {
    %c0_i32 = arith.constant 0 : i32
    %c0_i32_0 = arith.constant 0 : i32
    %c0_i32_1 = arith.constant 0 : i32
    return %c0_i32, %c0_i32_0 : i32, i32
  }
  func.func @transform_6(%arg0: i32) -> (i32, i32) {
    %c0_i32 = arith.constant 0 : i32
    %c0_i32_0 = arith.constant 0 : i32
    %c0_i32_1 = arith.constant 0 : i32
    return %c0_i32, %c0_i32_0 : i32, i32
  }
  func.func @transform_7(%arg0: i32) -> (i32, i32) {
    %c0_i32 = arith.constant 0 : i32
    %c0_i32_0 = arith.constant 0 : i32
    %c0_i32_1 = arith.constant 0 : i32
    return %c0_i32, %c0_i32_0 : i32, i32
  }
  func.func @transform_8(%arg0: i32) -> (i32, i32) {
    %c0_i32 = arith.constant 0 : i32
    %c0_i32_0 = arith.constant 0 : i32
    %c0_i32_1 = arith.constant 0 : i32
    return %c0_i32, %c0_i32_0 : i32, i32
  }
  func.func @transform_9(%arg0: i32) -> (i32, i32) {
    %c0_i32 = arith.constant 0 : i32
    %c0_i32_0 = arith.constant 0 : i32
    return %c0_i32, %arg0 : i32, i32
  }
}

</mosaic_0001>

<bundles_post_ra>
// kernel: tpu_custom_call.1
= control target key start
LH: loop header
LB: loop body
LE: loop exit
PB: predicated region body
PF: predicated region fallthrough
CT: control target
= control target key end

     0   :  { %v1289_v3 = vmov 0   ;;  %vm363_vm0 = vcmask 261120   ;;  %s1857_s0 = inlined_call_operand.vmem [shape: f32[8,32], index: 0, kind: input, shape index: {}]   ;;  %s1858_s1 = inlined_call_operand.vmem [shape: bf16[256,32], index: 1, kind: input, shape index: {}]   ;;  %s1859_s2 = inlined_call_operand.vmem [shape: f32[256,1], index: 2, kind: input, shape index: {}]   ;;  %s1860_s3 = inlined_call_operand.vmem [shape: bf16[128,256], index: 3, kind: input, shape index: {}]   ;;  %s1861_s4 = inlined_call_operand.vmem [shape: f32[128,1], index: 4, kind: input, shape index: {}]   ;;  %s1862_s5 = inlined_call_operand.vmem [shape: bf16[64,128], index: 5, kind: input, shape index: {}]   ;;  %s1863_s6 = inlined_call_operand.vmem [shape: f32[64,1], index: 6, kind: input, shape index: {}]   ;;  %s1864_s7 = inlined_call_operand.vmem [shape: bf16[1,64], index: 7, kind: input, shape index: {}]   ;;  %s1865_s8 = inlined_call_operand.<no memory space> [shape: f32[1,1], index: 8, kind: input, shape index: {}]   ;;  %s1866_s9 = inlined_call_operand.hbm [shape: f32[1,8], index: 9, kind: output, shape index: {}]  }
   0x1   :  { %v121_v0 = vld [vmem:[%s1859_s2 + $0xf0] sm:$0xff]  ;;  %1261 = vset.pattern.permute.xlu1 %v1289_v3  ;;  %1260 = vset.pattern.permute.xlu0 %v1289_v3  ;;  %v50_v4 = vld [vmem:[%s1857_s0 + $0x78] sm:$0xff]  ;;  %v47_v6 = vld [vmem:[%s1857_s0 + $0x60] sm:$0xff] }
   0x2   :  { %v105_v1 = vld [vmem:[%s1859_s2 + $0x70] sm:$0xff]  ;;  %275 = vperm.xlu0 %1260, %v121_v0   ;;  %v48_v7 = vld [vmem:[%s1857_s0 + $0x68] sm:$0xff]  ;;  %1262 = vset.pattern.permute.xlu2 %v1289_v3  ;;  %v119_v10 = vld [vmem:[%s1859_s2 + $0xe0] sm:$0xff] }
   0x3   :  { %v49_v2 = vld [vmem:[%s1857_s0 + $0x70] sm:$0xff]  ;;  %195 = vperm.xlu1 %1261, %v105_v1   ;;  %v57_v9 = vpack.c.bf16 %v48_v7, %v47_v6  ;;  %v122_v11 = vld [vmem:[%s1859_s2 + $0xf8] sm:$0xff]  ;;  %265 = vperm.xlu2 %1262, %v119_v10  }
   0x4   :  { %v58_v5 = vpack.c.bf16 %v50_v4, %v49_v2  ;;  %v106_v12 = vld [vmem:[%s1859_s2 + $0x78] sm:$0xff] }
   0x6   :  { %v434_v8 = vsel %vm363_vm0, %v58_v5, 0 }
   0x7   :  { %436 = vmatpush.bf16.xpose.msra.mxu0 %v434_v8  ;;  %1242 = vmatpush.bf16.xpose.msra.mxu3 %v434_v8 }
   0x8   :  { %15 = vsyncpa [#allocation4], 0  ;;  %v431_v13 = vsel %vm363_vm0, %v57_v9, 0  ;;  %v45_v14 = vld [vmem:[%s1857_s0 + $0x50] sm:$0xff]  ;;  %v46_v15 = vld [vmem:[%s1857_s0 + $0x58] sm:$0xff]  ;;  %vm1011_vm1 = vcmask 523264  }
   0x9   :  { %v120_v16 = vld [vmem:[%s1859_s2 + $0xe8] sm:$0xff]  ;;  %v56_v17 = vpack.c.bf16 %v46_v15, %v45_v14  ;;  %v103_v19 = vld [vmem:[%s1859_s2 + $0x60] sm:$0xff]  ;;  %v117_v23 = vld [vmem:[%s1859_s2 + $0xd0] sm:$0xff]  ;;  %s1290_s24 = smov [#allocation3]  }
   0xa   :  { %280 = vperm.xlu0 %1260, %v122_v11   ;;  %v104_v18 = vld [vmem:[%s1859_s2 + $0x68] sm:$0xff]  ;;  %v43_v21 = vld [vmem:[%s1857_s0 + $0x40] sm:$0xff]  ;;  %v118_v25 = vld [vmem:[%s1859_s2 + $0xd8] sm:$0xff]  ;;  %s1034_s25 = sshll.u32 %s1290_s24, 4  ;;  %s1035_s25 = int_to_ptr.vmem [resolvable:$true] %s1034_s25 }
   0xb   :  { %200 = vperm.xlu1 %1261, %v106_v12   ;;  %270 = vperm.xlu2 %1262, %v120_v16   ;;  %v428_v20 = vsel %vm363_vm0, %v56_v17, 0  ;;  %v44_v22 = vld [vmem:[%s1857_s0 + $0x48] sm:$0xff]  ;;  %v101_v26 = vld [vmem:[%s1859_s2 + $0x50] sm:$0xff]  ;;  %v42_v29 = vld [vmem:[%s1857_s0 + $0x38] sm:$0xff] }
   0xc   :  { %v55_v24 = vpack.c.bf16 %v44_v22, %v43_v21  ;;  %v41_v28 = vld [vmem:[%s1857_s0 + $0x30] sm:$0xff]  ;;  %v102_v30 = vld [vmem:[%s1859_s2 + $0x58] sm:$0xff]  ;;  %v115_v32 = vld [vmem:[%s1859_s2 + $0xc0] sm:$0xff] }
   0xd   :  { %v54_v31 = vpack.c.bf16 %v42_v29, %v41_v28  ;;  %v116_v33 = vld [vmem:[%s1859_s2 + $0xc8] sm:$0xff]  ;;  %v39_v35 = vld [vmem:[%s1857_s0 + $0x20] sm:$0xff]  ;;  %v113_v39 = vld [vmem:[%s1859_s2 + $0xb0] sm:$0xff] }
   0xe   :  { %v425_v27 = vsel %vm363_vm0, %v55_v24, 0  ;;  %v40_v36 = vld [vmem:[%s1857_s0 + $0x28] sm:$0xff]  ;;  %v99_v37 = vld [vmem:[%s1859_s2 + $0x40] sm:$0xff]  ;;  %v37_v42 = vld [vmem:[%s1857_s0 + $0x10] sm:$0xff] }
   0xf   :  { %437 = vmatpush.bf16.xpose.msra.mxu0 %v431_v13  ;;  %1243 = vmatpush.bf16.xpose.msra.mxu3 %v431_v13  ;;  %v422_v34 = vsel %vm363_vm0, %v54_v31, 0  ;;  %v53_v38 = vpack.c.bf16 %v40_v36, %v39_v35  ;;  %v100_v40 = vld [vmem:[%s1859_s2 + $0x48] sm:$0xff]  ;;  %v38_v43 = vld [vmem:[%s1857_s0 + $0x18] sm:$0xff]  ;;  %v97_v47 = vld [vmem:[%s1859_s2 + $0x30] sm:$0xff] }
  0x10   :  { %v114_v44 = vld [vmem:[%s1859_s2 + $0xb8] sm:$0xff]  ;;  %v52_v45 = vpack.c.bf16 %v38_v43, %v37_v42  ;;  %v35_v49 = vld [vmem:[%s1857_s0] sm:$0xff]  ;;  %v36_v50 = vld [vmem:[%s1857_s0 + $0x8] sm:$0xff] }
  0x11   :  { %v419_v41 = vsel %vm363_vm0, %v53_v38, 0  ;;  %v98_v46 = vld [vmem:[%s1859_s2 + $0x38] sm:$0xff]  ;;  %v111_v51 = vld [vmem:[%s1859_s2 + $0xa0] sm:$0xff]  ;;  %v51_v52 = vpack.c.bf16 %v36_v50, %v35_v49  ;;  %v112_v53 = vld [vmem:[%s1859_s2 + $0xa8] sm:$0xff] }
  0x12   :  { %185 = vperm.xlu0 %1260, %v103_v19   ;;  %v416_v48 = vsel %vm363_vm0, %v52_v45, 0  ;;  %v95_v54 = vld [vmem:[%s1859_s2 + $0x20] sm:$0xff]  ;;  %v96_v56 = vld [vmem:[%s1859_s2 + $0x28] sm:$0xff]  ;;  %v109_v57 = vld [vmem:[%s1859_s2 + $0x90] sm:$0xff] }
  0x13   :  { %190 = vperm.xlu1 %1261, %v104_v18   ;;  %255 = vperm.xlu2 %1262, %v117_v23   ;;  %v413_v55 = vsel %vm363_vm0, %v51_v52, 0  ;;  %v110_v58 = vld [vmem:[%s1859_s2 + $0x98] sm:$0xff]  ;;  %v1206_v59 = vld [vmem:[%s1858_s1] sm:$0xff]  ;;  %v1215_v60 = vld [vmem:[%s1858_s1 + $0x48] sm:$0xff] }
  0x14   :  { %v93_v61 = vld [vmem:[%s1859_s2 + $0x10] sm:$0xff]  ;;  %v107_v62 = vld [vmem:[%s1859_s2 + $0x80] sm:$0xff]  ;;  %v94_v63 = vld [vmem:[%s1859_s2 + $0x18] sm:$0xff] }
  0x15   :  { %v108_v0 = vld [vmem:[%s1859_s2 + $0x88] sm:$0xff]  ;;  %v91_v2 = vld [vmem:[%s1859_s2] sm:$0xff]  ;;  %v1216_v4 = vld [vmem:[%s1858_s1 + $0x50] sm:$0xff] }
  0x16   :  { %v92_v1 = vld [vmem:[%s1859_s2 + $0x8] sm:$0xff]  ;;  %v603_v5 = vld [vmem:[%s1861_s4 + $0x70] sm:$0xff]  ;;  %v601_v6 = vld [vmem:[%s1861_s4 + $0x60] sm:$0xff] }
  0x17   :  { %438 = vmatpush.bf16.xpose.msra.mxu0 %v428_v20  ;;  %1244 = vmatpush.bf16.xpose.msra.mxu3 %v428_v20  ;;  %v1207_v3 = vld [vmem:[%s1858_s1 + $0x8] sm:$0xff]  ;;  %v604_v7 = vld [vmem:[%s1861_s4 + $0x78] sm:$0xff]  ;;  %v599_v10 = vld [vmem:[%s1861_s4 + $0x50] sm:$0xff] }
  0x18   :  { %v602_v8 = vld [vmem:[%s1861_s4 + $0x68] sm:$0xff]  ;;  %v600_v9 = vld [vmem:[%s1861_s4 + $0x58] sm:$0xff]  ;;  %v1208_v11 = vld [vmem:[%s1858_s1 + $0x10] sm:$0xff] }
  0x19   :  { %v1217_v12 = vld [vmem:[%s1858_s1 + $0x58] sm:$0xff]  ;;  %v597_v13 = vld [vmem:[%s1861_s4 + $0x40] sm:$0xff]  ;;  %v595_v14 = vld [vmem:[%s1861_s4 + $0x30] sm:$0xff] }
  0x1a   :  { %260 = vperm.xlu0 %1260, %v118_v25   ;;  %v598_v15 = vld [vmem:[%s1861_s4 + $0x48] sm:$0xff]  ;;  %v596_v16 = vld [vmem:[%s1861_s4 + $0x38] sm:$0xff]  ;;  %v593_v18 = vld [vmem:[%s1861_s4 + $0x20] sm:$0xff] }
  0x1b   :  { %175 = vperm.xlu1 %1261, %v101_v26   ;;  %180 = vperm.xlu2 %1262, %v102_v30   ;;  %v594_v17 = vld [vmem:[%s1861_s4 + $0x28] sm:$0xff]  ;;  %v1209_v19 = vld [vmem:[%s1858_s1 + $0x18] sm:$0xff]  ;;  %v1218_v20 = vld [vmem:[%s1858_s1 + $0x60] sm:$0xff] }
  0x1c   :  { %v591_v23 = vld [vmem:[%s1861_s4 + $0x10] sm:$0xff]  ;;  %v589_v24 = vld [vmem:[%s1861_s4] sm:$0xff]  ;;  %v592_v25 = vld [vmem:[%s1861_s4 + $0x18] sm:$0xff] }
  0x1d   :  { %v590_v28 = vld [vmem:[%s1861_s4 + $0x8] sm:$0xff]  ;;  %v902_v29 = vld [vmem:[%s1863_s6 + $0x38] sm:$0xff]  ;;  %v901_v30 = vld [vmem:[%s1863_s6 + $0x30] sm:$0xff] }
  0x1e   :  { %v1210_v31 = vld [vmem:[%s1858_s1 + $0x20] sm:$0xff]  ;;  %v900_v38 = vld [vmem:[%s1863_s6 + $0x28] sm:$0xff]  ;;  %v1220_v45 = vld [vmem:[%s1858_s1 + $0x70] sm:$0xff] }
  0x1f   :  { %439 = vmatpush.bf16.xpose.msra.mxu0 %v425_v27  ;;  %1245 = vmatpush.bf16.xpose.msra.mxu3 %v425_v27  ;;  %v899_v35 = vld [vmem:[%s1863_s6 + $0x20] sm:$0xff]  ;;  %v896_v42 = vld [vmem:[%s1863_s6 + $0x8] sm:$0xff]  ;;  %v1212_v52 = vld [vmem:[%s1858_s1 + $0x30] sm:$0xff] }
  0x20   :  { %v895_v43 = vld [vmem:[%s1863_s6] sm:$0xff] }
  0x22   :  { %245 = vperm.xlu0 %1260, %v115_v32   ;;  %v1219_v32 = vld [vmem:[%s1858_s1 + $0x68] sm:$0xff] }
  0x23   :  { %250 = vperm.xlu1 %1261, %v116_v33   ;;  %165 = vperm.xlu2 %1262, %v99_v37   ;;  %v897_v37 = vld [vmem:[%s1863_s6 + $0x10] sm:$0xff] }
  0x27   :  { %440 = vmatpush.bf16.xpose.msra.mxu0 %v422_v34  ;;  %1246 = vmatpush.bf16.xpose.msra.mxu3 %v422_v34 }
  0x2a   :  { %170 = vperm.xlu0 %1260, %v100_v40  }
  0x2b   :  { %235 = vperm.xlu1 %1261, %v113_v39   ;;  %240 = vperm.xlu2 %1262, %v114_v44   ;;  %v1211_v44 = vld [vmem:[%s1858_s1 + $0x28] sm:$0xff] }
  0x2f   :  { %441 = vmatpush.bf16.xpose.msra.mxu0 %v419_v41  ;;  %1247 = vmatpush.bf16.xpose.msra.mxu3 %v419_v41  ;;  %v898_v41 = vld [vmem:[%s1863_s6 + $0x18] sm:$0xff] }
  0x32   :  { %155 = vperm.xlu0 %1260, %v97_v47  }
  0x33   :  { %160 = vperm.xlu1 %1261, %v98_v46   ;;  %225 = vperm.xlu2 %1262, %v111_v51  }
  0x37   :  { %442 = vmatpush.bf16.xpose.msra.mxu0 %v416_v48  ;;  %1248 = vmatpush.bf16.xpose.msra.mxu3 %v416_v48 }
  0x3a   :  { %230 = vperm.xlu0 %1260, %v112_v53   ;;  %v1221_v53 = vld [vmem:[%s1858_s1 + $0x78] sm:$0xff] }
  0x3b   :  { %145 = vperm.xlu1 %1261, %v95_v54   ;;  %150 = vperm.xlu2 %1262, %v96_v56  }
  0x3f   :  { %443 = vmatpush.bf16.xpose.msra.mxu0 %v413_v55  ;;  %1249 = vmatpush.bf16.xpose.msra.mxu3 %v413_v55 }
  0x42   :  { %215 = vperm.xlu0 %1260, %v109_v57  }
  0x43   :  { %220 = vperm.xlu1 %1261, %v110_v58   ;;  %135 = vperm.xlu2 %1262, %v93_v61  }
  0x46   :  { %1109 = vmatmul.msk.bf16.vlgmr.msra.gmra.mxu0 %vm363_vm0, %v1206_v59  ;;  %1118 = vmatmul.msk.bf16.vlgmr.msra.gmra.mxu3 %vm363_vm0, %v1215_v60  ;;  %v1213_v60 = vld [vmem:[%s1858_s1 + $0x38] sm:$0xff] }
  0x4a   :  { %140 = vperm.xlu0 %1260, %v94_v63  }
  0x4b   :  { %205 = vperm.xlu1 %1261, %v107_v62   ;;  %210 = vperm.xlu2 %1262, %v108_v0  }
  0x52   :  { %125 = vperm.xlu0 %1260, %v91_v2   ;;  %v1214_v2 = vld [vmem:[%s1858_s1 + $0x40] sm:$0xff]  ;;  %s1036_s1 = sshll.u32 %s1866_s9, 4  ;;  %s1037_s1 = int_to_ptr.hbm [resolvable:$true] %s1036_s1 }
  0x53   :  { %130 = vperm.xlu1 %1261, %v92_v1   ;;  %677 = vperm.xlu2 %1262, %v603_v5  }
  0x56   :  { %1110 = vmatmul.msk.bf16.gmra.mxu0 %vm363_vm0, %v1207_v3  ;;  %1119 = vmatmul.msk.bf16.gmra.mxu3 %vm363_vm0, %v1216_v4 }
  0x5a   :  { %682 = vperm.xlu0 %1260, %v604_v7  }
  0x5b   :  { %667 = vperm.xlu1 %1261, %v601_v6   ;;  %672 = vperm.xlu2 %1262, %v602_v8  }
  0x5d   :  { %v1602_v36 = vpop.permute.xlu2 %265 }
  0x62   :  { %657 = vperm.xlu0 %1260, %v599_v10  }
  0x63   :  { %662 = vperm.xlu1 %1261, %v600_v9   ;;  %647 = vperm.xlu2 %1262, %v597_v13  }
  0x65   :  { %v1629_v46 = vpop.permute.xlu2 %270 }
  0x66   :  { %1111 = vmatmul.msk.bf16.gmra.mxu0 %vm363_vm0, %v1208_v11  ;;  %1120 = vmatmul.msk.bf16.gmra.mxu3 %vm363_vm0, %v1217_v12 }
  0x6a   :  { %652 = vperm.xlu0 %1260, %v598_v15  }
  0x6b   :  { %637 = vperm.xlu1 %1261, %v595_v14   ;;  %642 = vperm.xlu2 %1262, %v596_v16  }
  0x6d   :  { %v1637_v49 = vpop.permute.xlu2 %255 }
  0x72   :  { %627 = vperm.xlu0 %1260, %v593_v18  }
  0x73   :  { %632 = vperm.xlu1 %1261, %v594_v17   ;;  %617 = vperm.xlu2 %1262, %v591_v23  }
  0x74   :  { %v1561_v21 = vpop.permute.xlu0 %275 }
  0x75   :  { %v1563_v22 = vpop.permute.xlu1 %195  ;;  %v1653_v56 = vpop.permute.xlu2 %180 }
  0x76   :  { %1112 = vmatmul.msk.bf16.gmra.mxu0 %vm363_vm0, %v1209_v19  ;;  %1121 = vmatmul.msk.bf16.gmra.mxu3 %vm363_vm0, %v1218_v20 }
  0x7a   :  { %622 = vperm.xlu0 %1260, %v592_v25  }
  0x7b   :  { %607 = vperm.xlu1 %1261, %v589_v24   ;;  %612 = vperm.xlu2 %1262, %v590_v28  }
  0x7c   :  { %v1574_v26 = vpop.permute.xlu0 %280 }
  0x7d   :  { %v1576_v27 = vpop.permute.xlu1 %200  ;;  %v1655_v59 = vpop.permute.xlu2 %165 }
  0x82   :  { %935 = vperm.xlu0 %1260, %v901_v30  }
  0x83   :  { %940 = vperm.xlu1 %1261, %v902_v29   ;;  %925 = vperm.xlu2 %1262, %v899_v35  }
  0x84   :  { %v1597_v34 = vpop.permute.xlu0 %185 }
  0x85   :  { %v1595_v33 = vpop.permute.xlu1 %190  ;;  %v241_v63 = vpop.permute.xlu2 %240 }
  0x86   :  { %1113 = vmatmul.msk.bf16.gmra.mxu0 %vm363_vm0, %v1210_v31  ;;  %1122 = vmatmul.msk.bf16.gmra.mxu3 %vm363_vm0, %v1219_v32 }
  0x8a   :  { %930 = vperm.xlu0 %1260, %v900_v38  }
  0x8b   :  { %915 = vperm.xlu1 %1261, %v897_v37   ;;  %920 = vperm.xlu2 %1262, %v898_v41  }
  0x8c   :  { %v1610_v39 = vpop.permute.xlu0 %260 }
  0x8d   :  { %v1612_v40 = vpop.permute.xlu1 %175  ;;  %v226_v4 = vpop.permute.xlu2 %225 }
  0x92   :  { %905 = vperm.xlu0 %1260, %v895_v43  }
  0x93   :  { %910 = vperm.xlu1 %1261, %v896_v42  }
  0x94   :  { %v1633_v47 = vpop.permute.xlu0 %245 }
  0x95   :  { %v1635_v48 = vpop.permute.xlu1 %250  ;;  %v151_v13 = vpop.permute.xlu2 %150 }
  0x96   :  { %1114 = vmatmul.msk.bf16.gmra.mxu0 %vm363_vm0, %v1211_v44  ;;  %1123 = vmatmul.msk.bf16.gmra.mxu3 %vm363_vm0, %v1220_v45 }
  0x9c   :  { %v1639_v51 = vpop.permute.xlu0 %170 }
  0x9d   :  { %v236_v50 = vpop.permute.xlu1 %235  ;;  %v136_v24 = vpop.permute.xlu2 %135 }
  0xa4   :  { %v1651_v55 = vpop.permute.xlu0 %155 }
  0xa5   :  { %v1649_v54 = vpop.permute.xlu1 %160 }
  0xa6   :  { %1115 = vmatmul.msk.bf16.gmra.mxu0 %vm363_vm0, %v1212_v52  ;;  %1124 = vmatmul.msk.bf16.gmra.mxu3 %vm363_vm0, %v1221_v53 }
  0xac   :  { %v231_v57 = vpop.permute.xlu0 %230 }
  0xad   :  { %v146_v58 = vpop.permute.xlu1 %145 }
  0xb4   :  { %v216_v61 = vpop.permute.xlu0 %215 }
  0xb5   :  { %v221_v62 = vpop.permute.xlu1 %220 }
  0xb6   :  { %1116 = vmatmul.msk.bf16.gmra.mxu0 %vm363_vm0, %v1213_v60 }
  0xbc   :  { %v141_v0 = vpop.permute.xlu0 %140 }
  0xbd   :  { %v1661_v1 = vpop.permute.xlu1 %205 }
  0xc3   :  { %v445_v3 = vpop.f32.mrf.mxu0 }
  0xc4   :  { %v126_v5 = vpop.permute.xlu0 %125 }
  0xc5   :  { %v446_v7 = vadd.f32 %v445_v3, %v126_v5  ;;  %v131_v8 = vpop.permute.xlu1 %130 }
  0xc6   :  { %1117 = vmatmul.msk.bf16.gmra.mxu0 %vm363_vm0, %v1214_v2 }
  0xc7   :  { %v525_v11 = vmax.f32 %v446_v7, 0.0 }
  0xc9   :  { %v490_v6 = vpop.f32.mrf.mxu3 }
  0xca   :  { %v491_v14 = vadd.f32 %v490_v6, %v216_v61 }
  0xcb   :  { %v447_v9 = vpop.f32.mrf.mxu0 }
  0xcc   :  { %v448_v10 = vadd.f32 %v447_v9, %v131_v8  ;;  %v543_v19 = vmax.f32 %v491_v14, 0.0 }
  0xce   :  { %v526_v12 = vmax.f32 %v448_v10, 0.0 }
  0xd0   :  { %v1667_v15 = vpack.c.bf16 %v526_v12, %v525_v11 }
  0xd1   :  { %v492_v16 = vpop.f32.mrf.mxu3 }
  0xd2   :  { %v493_v17 = vadd.f32 %v492_v16, %v221_v62 }
  0xd3   :  { %v450_v18 = vpop.f32.mrf.mxu0 }
  0xd4   :  { %v544_v20 = vmax.f32 %v493_v17, 0.0  ;;  %v451_v28 = vadd.f32 %v450_v18, %v136_v24 }
  0xd6   :  { %v1669_v23 = vpack.c.bf16 %v544_v20, %v543_v19  ;;  %v527_v31 = vmax.f32 %v451_v28, 0.0 }
  0xd9   :  { %v495_v25 = vpop.f32.mrf.mxu3 }
  0xda   :  { %v496_v35 = vadd.f32 %v495_v25, %v226_v4 }
  0xdb   :  { %v452_v29 = vpop.f32.mrf.mxu0 }
  0xdc   :  { %v453_v30 = vadd.f32 %v452_v29, %v141_v0  ;;  %v545_v43 = vmax.f32 %v496_v35, 0.0 }
  0xde   :  { %v528_v32 = vmax.f32 %v453_v30, 0.0 }
  0xe0   :  { %v1671_v37 = vpack.c.bf16 %v528_v32, %v527_v31 }
  0xe1   :  { %v497_v38 = vpop.f32.mrf.mxu3 }
  0xe2   :  { %v498_v41 = vadd.f32 %v497_v38, %v231_v57 }
  0xe3   :  { %v455_v42 = vpop.f32.mrf.mxu0 }
  0xe4   :  { %v546_v44 = vmax.f32 %v498_v41, 0.0  ;;  %v456_v53 = vadd.f32 %v455_v42, %v146_v58 }
  0xe6   :  { %v1673_v45 = vpack.c.bf16 %v546_v44, %v545_v43  ;;  %v529_v62 = vmax.f32 %v456_v53, 0.0 }
  0xe9   :  { %v500_v52 = vpop.f32.mrf.mxu3 }
  0xea   :  { %v501_v3 = vadd.f32 %v500_v52, %v236_v50 }
  0xeb   :  { %v457_v60 = vpop.f32.mrf.mxu0 }
  0xec   :  { %v458_v61 = vadd.f32 %v457_v60, %v151_v13  ;;  %v547_v7 = vmax.f32 %v501_v3, 0.0 }
  0xee   :  { %v530_v2 = vmax.f32 %v458_v61, 0.0 }
  0xf0   :  { %v1675_v0 = vpack.c.bf16 %v530_v2, %v529_v62 }
  0xf1   :  { %v502_v5 = vpop.f32.mrf.mxu3 }
  0xf2   :  { %v503_v4 = vadd.f32 %v502_v5, %v241_v63 }
  0xf3   :  { %v460_v6 = vpop.f32.mrf.mxu0 }
  0xf4   :  { %v548_v8 = vmax.f32 %v503_v4, 0.0  ;;  %v461_v10 = vadd.f32 %v460_v6, %v1651_v55 }
  0xf6   :  { %v1677_v57 = vpack.c.bf16 %v548_v8, %v547_v7  ;;  %v531_v12 = vmax.f32 %v461_v10, 0.0 }
  0xf9   :  { %v505_v9 = vpop.f32.mrf.mxu3 }
  0xfa   :  { %v506_v2 = vadd.f32 %v505_v9, %v1633_v47 }
  0xfb   :  { %v462_v11 = vpop.f32.mrf.mxu0 }
  0xfc   :  { %v463_v58 = vadd.f32 %v462_v11, %v1649_v54 }
  0xfe   :  { %v532_v13 = vmax.f32 %v463_v58, 0.0 }
 0x100   :  { %v1681_v14 = vpack.c.bf16 %v532_v13, %v531_v12 }
 0x101   :  { %v507_v50 = vpop.f32.mrf.mxu3 }
 0x103   :  { %v465_v16 = vpop.f32.mrf.mxu0 }
 0x104   :  { %v466_v12 = vadd.f32 %v465_v16, %v1655_v59  ;;  %v1222_v59 = vld [vmem:[%s1860_s3 + $0x4] sm:$0xf] }
 0x109   :  { %v510_v17 = vpop.f32.mrf.mxu3 }
 0x10a   :  { %v511_v53 = vadd.f32 %v510_v17, %v1637_v49  ;;  %v533_v17 = vmax.f32 %v466_v12, 0.0  ;;  %v1183_v12 = vld [vmem:[%s1860_s3 + $0x70] sm:$0xf] }
 0x10b   :  { %v467_v18 = vpop.f32.mrf.mxu0 }
 0x111   :  { %v512_v63 = vpop.f32.mrf.mxu3 }
 0x112   :  { %v513_v43 = vadd.f32 %v512_v63, %v1610_v39 }
 0x113   :  { %v470_v19 = vpop.f32.mrf.mxu0 }
 0x114   :  { %v552_v61 = vmax.f32 %v513_v43, 0.0  ;;  %v471_v47 = vadd.f32 %v470_v19, %v1612_v40  ;;  %v211_v40 = vpop.permute.xlu2 %210  ;;  %v1151_v43 = vld [vmem:[%s1860_s3 + $0x30] sm:$0xf] }
 0x116   :  { %v535_v13 = vmax.f32 %v471_v47, 0.0 }
 0x119   :  { %v515_v20 = vpop.f32.mrf.mxu3 }
 0x11a   :  { %v516_v38 = vadd.f32 %v515_v20, %v1602_v36  ;;  %v551_v36 = vmax.f32 %v511_v53, 0.0  ;;  %v1230_v53 = vld [vmem:[%s1860_s3 + $0x44] sm:$0xf] }
 0x11b   :  { %v472_v24 = vpop.f32.mrf.mxu0 }
 0x11c   :  { %v553_v60 = vmax.f32 %v516_v38, 0.0  ;;  %v586_v7 = vpack.c.bf16 %v552_v61, %v551_v36  ;;  %v473_v8 = vadd.f32 %v472_v24, %v1653_v56  ;;  %v1228_v38 = vld [vmem:[%s1860_s3 + $0x34] sm:$0xf]  ;;  %v1159_v61 = vld [vmem:[%s1860_s3 + $0x40] sm:$0xf] }
 0x11e   :  { %v536_v58 = vmax.f32 %v473_v8, 0.0  ;;  %v1175_v8 = vld [vmem:[%s1860_s3 + $0x60] sm:$0xf] }
 0x120   :  { %v578_v56 = vpack.c.bf16 %v536_v58, %v535_v13  ;;  %v1237_v13 = vld [vmem:[%s1860_s3 + $0x74] sm:$0xf0] }
 0x121   :  { %v517_v25 = vpop.f32.mrf.mxu3 }
 0x122   :  { %v518_v54 = vadd.f32 %v517_v25, %v1629_v46 }
 0x123   :  { %v475_v28 = vpop.f32.mrf.mxu0 }
 0x124   :  { %v554_v44 = vmax.f32 %v518_v54, 0.0  ;;  %v476_v49 = vadd.f32 %v475_v28, %v1597_v34  ;;  %v1135_v28 = vld [vmem:[%s1860_s3 + $0x10] sm:$0xf]  ;;  %v1143_v54 = vld [vmem:[%s1860_s3 + $0x20] sm:$0xf] }
 0x126   :  { %v587_v62 = vpack.c.bf16 %v554_v44, %v553_v60  ;;  %v537_v9 = vmax.f32 %v476_v49, 0.0  ;;  %v1229_v44 = vld [vmem:[%s1860_s3 + $0x34] sm:$0xf0]  ;;  %v1161_v60 = vld [vmem:[%s1860_s3 + $0x48] sm:$0xf0] }
 0x127   :  { %v1234_v49 = vld [vmem:[%s1860_s3 + $0x64] sm:$0xf] }
 0x129   :  { %v520_v29 = vpop.f32.mrf.mxu3 }
 0x12a   :  { %v521_v55 = vadd.f32 %v520_v29, %v1561_v21  ;;  %v508_v21 = vadd.f32 %v507_v50, %v1635_v48  ;;  %v549_v48 = vmax.f32 %v506_v2, 0.0  ;;  %v1225_v29 = vld [vmem:[%s1860_s3 + $0x14] sm:$0xf0]  ;;  %v1169_v2 = vld [vmem:[%s1860_s3 + $0x58] sm:$0xf0] }
 0x12b   :  { %v477_v30 = vpop.f32.mrf.mxu0 }
 0x12c   :  { %v555_v41 = vmax.f32 %v521_v55, 0.0  ;;  %v478_v3 = vadd.f32 %v477_v30, %v1595_v33  ;;  %v550_v5 = vmax.f32 %v508_v21, 0.0  ;;  %v1226_v30 = vld [vmem:[%s1860_s3 + $0x24] sm:$0xf]  ;;  %v1145_v55 = vld [vmem:[%s1860_s3 + $0x28] sm:$0xf0]  ;;  %v1164_v21 = vor.u32 %v1230_v53, %v1161_v60 }
 0x12e   :  { %v585_v33 = vpack.c.bf16 %v550_v5, %v549_v48  ;;  %v1787_v48 = vpop.permute.xlu1 %667 }
 0x131   :  { %v522_v31 = vpop.f32.mrf.mxu3 }
 0x132   :  { %v523_v32 = vadd.f32 %v522_v31, %v1574_v26  ;;  %v1148_v31 = vor.u32 %v1226_v30, %v1145_v55 }
 0x133   :  { %v480_v35 = vpop.f32.mrf.mxu0 }
 0x134   :  { %v556_v42 = vmax.f32 %v523_v32, 0.0  ;;  %v481_v46 = vadd.f32 %v480_v35, %v1563_v22  ;;  %v538_v22 = vmax.f32 %v478_v3, 0.0  ;;  %v1227_v32 = vld [vmem:[%s1860_s3 + $0x24] sm:$0xf0]  ;;  %v1167_v3 = vld [vmem:[%s1860_s3 + $0x50] sm:$0xf] }
 0x135   :  { %v1144_v35 = vor.u32 %v1227_v32, %v1143_v54 }
 0x136   :  { %v588_v52 = vpack.c.bf16 %v556_v42, %v555_v41  ;;  %v539_v4 = vmax.f32 %v481_v46, 0.0  ;;  %v579_v34 = vpack.c.bf16 %v538_v22, %v537_v9  ;;  %v1153_v41 = vld [vmem:[%s1860_s3 + $0x38] sm:$0xf0]  ;;  %v1231_v46 = vld [vmem:[%s1860_s3 + $0x44] sm:$0xf0]  ;;  %v1797_v9 = vpop.permute.xlu1 %662 }
 0x137   :  { %v1156_v42 = vor.u32 %v1228_v38, %v1153_v41  ;;  %v1235_v22 = vld [vmem:[%s1860_s3 + $0x64] sm:$0xf0] }
 0x138   :  { %814 = vmatpush.bf16.msra.mxu2 %v588_v52  ;;  %v1152_v52 = vor.u32 %v1229_v44, %v1151_v43 }
 0x13b   :  { %v482_v26 = vpop.f32.mrf.mxu0 }
 0x13c   :  { %v483_v39 = vadd.f32 %v482_v26, %v1576_v27  ;;  %815 = vmatpush.bf16.msra.mxu2 %v587_v62  ;;  %v468_v27 = vadd.f32 %v467_v18, %v1639_v51  ;;  %v1160_v62 = vor.u32 %v1231_v46, %v1159_v61  ;;  %v1232_v26 = vld [vmem:[%s1860_s3 + $0x54] sm:$0xf] }
 0x13d   :  { %v1172_v36 = vor.u32 %v1232_v26, %v1169_v2 }
 0x13e   :  { %v540_v6 = vmax.f32 %v483_v39, 0.0  ;;  %v534_v50 = vmax.f32 %v468_v27, 0.0  ;;  %v1233_v39 = vld [vmem:[%s1860_s3 + $0x54] sm:$0xf0] }
 0x13f   :  { %v1168_v5 = vor.u32 %v1233_v39, %v1167_v3 }
 0x140   :  { %816 = vmatpush.bf16.msra.mxu2 %v586_v7  ;;  %v580_v10 = vpack.c.bf16 %v540_v6, %v539_v4  ;;  %v577_v51 = vpack.c.bf16 %v534_v50, %v533_v17  ;;  %v1177_v4 = vld [vmem:[%s1860_s3 + $0x68] sm:$0xf0]  ;;  %v1785_v7 = vpop.permute.xlu2 %677  ;;  %v1184_v50 = vor.u32 %v1237_v13, %v1183_v12 }
 0x141   :  { %v1180_v6 = vor.u32 %v1234_v49, %v1177_v4 }
 0x142   :  { %765 = vmatpush.bf16.msra.mxu1 %v580_v10  ;;  %v1176_v10 = vor.u32 %v1235_v22, %v1175_v8 }
 0x143   :  { %v485_v11 = vpop.f32.mrf.mxu0 }
 0x144   :  { %817 = vmatpush.bf16.msra.mxu2 %v585_v33  ;;  %v486_v19 = vadd.f32 %v485_v11, %v1661_v1  ;;  %v1236_v33 = vld [vmem:[%s1860_s3 + $0x74] sm:$0xf]  ;;  %v1185_v11 = vld [vmem:[%s1860_s3 + $0x78] sm:$0xf0] }
 0x145   :  { %v1188_v27 = vor.u32 %v1236_v33, %v1185_v11 }
 0x146   :  { %766 = vmatpush.bf16.msra.mxu1 %v579_v34  ;;  %v541_v24 = vmax.f32 %v486_v19, 0.0  ;;  %v638_v34 = vpop.permute.xlu1 %637 }
 0x148   :  { %818 = vmatpush.bf16.msra.mxu2 %v1677_v57  ;;  %v1129_v57 = vld [vmem:[%s1860_s3 + $0x8] sm:$0xf0]  ;;  %v1795_v47 = vpop.permute.xlu2 %672 }
 0x149   :  { %v1132_v16 = vor.u32 %v1222_v59, %v1129_v57 }
 0x14a   :  { %767 = vmatpush.bf16.msra.mxu1 %v578_v56  ;;  %v1811_v56 = vpop.permute.xlu0 %682 }
 0x14b   :  { %v487_v63 = vpop.f32.mrf.mxu0 }
 0x14c   :  { %v488_v20 = vadd.f32 %v487_v63, %v211_v40  ;;  %819 = vmatpush.bf16.msra.mxu2 %v1673_v45  ;;  %v1223_v45 = vld [vmem:[%s1860_s3 + $0x4] sm:$0xf0] }
 0x14e   :  { %v542_v18 = vmax.f32 %v488_v20, 0.0  ;;  %768 = vmatpush.bf16.msra.mxu1 %v577_v51  ;;  %v633_v40 = vpop.permute.xlu1 %632 }
 0x150   :  { %820 = vmatpush.bf16.msra.mxu2 %v1669_v23  ;;  %v581_v1 = vpack.c.bf16 %v542_v18, %v541_v24  ;;  %v1127_v23 = vld [vmem:[%s1860_s3] sm:$0xf]  ;;  %v648_v58 = vpop.permute.xlu2 %647 }
 0x151   :  { %v1128_v25 = vor.u32 %v1223_v45, %v1127_v23 }
 0x152   :  { %769 = vmatpush.bf16.msra.mxu1 %v1681_v14  ;;  %v1224_v14 = vld [vmem:[%s1860_s3 + $0x14] sm:$0xf]  ;;  %v1813_v63 = vpop.permute.xlu0 %657 }
 0x154   :  { %821 = vmatpush.bf16.msra.mxu2 %v581_v1 }
 0x156   :  { %770 = vmatpush.bf16.msra.mxu1 %v1675_v0  ;;  %v1137_v0 = vld [vmem:[%s1860_s3 + $0x18] sm:$0xf0]  ;;  %v608_v51 = vpop.permute.xlu1 %607 }
 0x157   :  { %822 = vmatmul.bf16.vlgmr.msra.gmra.mxu2 %v1132_v16 }
 0x158   :  { %v643_v17 = vpop.permute.xlu2 %642 }
 0x15a   :  { %771 = vmatpush.bf16.msra.mxu1 %v1671_v37  ;;  %v1140_v37 = vor.u32 %v1224_v14, %v1137_v0  ;;  %v1815_v57 = vpop.permute.xlu0 %652 }
 0x15e   :  { %772 = vmatpush.bf16.msra.mxu1 %v1667_v15  ;;  %v1136_v15 = vor.u32 %v1225_v29, %v1135_v28 }
 0x160   :  { %v618_v20 = vpop.permute.xlu2 %617 }
 0x161   :  { %773 = vmatmul.bf16.vlgmr.msra.gmra.mxu1 %v1128_v25 }
 0x162   :  { %v628_v28 = vpop.permute.xlu0 %627 }
 0x167   :  { %827 = vmatmul.bf16.gmra.mxu2 %v1140_v37 }
 0x168   :  { %v613_v16 = vpop.permute.xlu2 %612 }
 0x16a   :  { %v623_v54 = vpop.permute.xlu0 %622 }
 0x171   :  { %778 = vmatmul.bf16.gmra.mxu1 %v1136_v15 }
 0x177   :  { %832 = vmatmul.bf16.gmra.mxu2 %v1148_v31 }
 0x181   :  { %783 = vmatmul.bf16.gmra.mxu1 %v1144_v35 }
 0x187   :  { %837 = vmatmul.bf16.gmra.mxu2 %v1156_v42 }
 0x191   :  { %788 = vmatmul.bf16.gmra.mxu1 %v1152_v52 }
 0x197   :  { %842 = vmatmul.bf16.gmra.mxu2 %v1164_v21 }
 0x1a1   :  { %793 = vmatmul.bf16.gmra.mxu1 %v1160_v62 }
 0x1a7   :  { %847 = vmatmul.bf16.gmra.mxu2 %v1172_v36 }
 0x1b1   :  { %798 = vmatmul.bf16.gmra.mxu1 %v1168_v5 }
 0x1b7   :  { %852 = vmatmul.bf16.gmra.mxu2 %v1180_v6 }
 0x1c1   :  { %803 = vmatmul.bf16.gmra.mxu1 %v1176_v10 }
 0x1c7   :  { %857 = vmatmul.bf16.gmra.mxu2 %v1188_v27 }
 0x1d1   :  { %808 = vmatmul.bf16.gmra.mxu1 %v1184_v50 }
 0x1da   :  { %v823_v19 = vpop.f32.mrf.mxu2 }
 0x1de   :  { %v774_v18 = vpop.f32.mrf.mxu1 }
 0x1df   :  { %v775_v24 = vadd.f32 %v774_v18, %v608_v51 }
 0x1e1   :  { %v824_v59 = vadd.f32 %v823_v19, %v775_v24 }
 0x1e2   :  { %v825_v1 = vpop.f32.mrf.mxu2 }
 0x1e3   :  { %v863_v0 = vmax.f32 %v824_v59, 0.0 }
 0x1e6   :  { %v776_v23 = vpop.f32.mrf.mxu1 }
 0x1e7   :  { %v777_v45 = vadd.f32 %v776_v23, %v613_v16 }
 0x1e9   :  { %v826_v25 = vadd.f32 %v825_v1, %v777_v45 }
 0x1ea   :  { %v828_v14 = vpop.f32.mrf.mxu2 }
 0x1eb   :  { %v864_v37 = vmax.f32 %v826_v25, 0.0 }
 0x1ed   :  { %v1817_v29 = vpack.c.bf16 %v864_v37, %v863_v0 }
 0x1ee   :  { %v779_v15 = vpop.f32.mrf.mxu1 }
 0x1ef   :  { %v780_v30 = vadd.f32 %v779_v15, %v618_v20 }
 0x1f1   :  { %v829_v55 = vadd.f32 %v828_v14, %v780_v30 }
 0x1f2   :  { %v830_v31 = vpop.f32.mrf.mxu2 }
 0x1f3   :  { %v865_v42 = vmax.f32 %v829_v55, 0.0 }
 0x1f6   :  { %v781_v32 = vpop.f32.mrf.mxu1 }
 0x1f7   :  { %v782_v35 = vadd.f32 %v781_v32, %v623_v54 }
 0x1f9   :  { %v831_v38 = vadd.f32 %v830_v31, %v782_v35 }
 0x1fa   :  { %v833_v41 = vpop.f32.mrf.mxu2 }
 0x1fb   :  { %v866_v43 = vmax.f32 %v831_v38, 0.0 }
 0x1fd   :  { %v1819_v44 = vpack.c.bf16 %v866_v43, %v865_v42 }
 0x1fe   :  { %v784_v52 = vpop.f32.mrf.mxu1 }
 0x1ff   :  { %v785_v53 = vadd.f32 %v784_v52, %v628_v28 }
 0x201   :  { %v834_v60 = vadd.f32 %v833_v41, %v785_v53 }
 0x202   :  { %v835_v21 = vpop.f32.mrf.mxu2 }
 0x203   :  { %v867_v2 = vmax.f32 %v834_v60, 0.0 }
 0x206   :  { %v786_v61 = vpop.f32.mrf.mxu1 }
 0x207   :  { %v787_v46 = vadd.f32 %v786_v61, %v633_v40  ;;  %v1241_v61 = vld [vmem:[%s1862_s5 + $0x18] sm:$0xff] }
 0x209   :  { %v836_v62 = vadd.f32 %v835_v21, %v787_v46  ;;  %v1239_v46 = vld [vmem:[%s1862_s5 + $0x8] sm:$0xff] }
 0x20a   :  { %v838_v26 = vpop.f32.mrf.mxu2 }
 0x20b   :  { %v868_v36 = vmax.f32 %v836_v62, 0.0 }
 0x20d   :  { %v1821_v3 = vpack.c.bf16 %v868_v36, %v867_v2  ;;  %v936_v36 = vpop.permute.xlu0 %935 }
 0x20e   :  { %v789_v39 = vpop.f32.mrf.mxu1 }
 0x20f   :  { %v790_v5 = vadd.f32 %v789_v39, %v638_v34  ;;  %v941_v39 = vpop.permute.xlu1 %940 }
 0x211   :  { %v839_v49 = vadd.f32 %v838_v26, %v790_v5 }
 0x212   :  { %v840_v4 = vpop.f32.mrf.mxu2 }
 0x213   :  { %v869_v33 = vmax.f32 %v839_v49, 0.0 }
 0x216   :  { %v791_v6 = vpop.f32.mrf.mxu1 }
 0x217   :  { %v792_v8 = vadd.f32 %v791_v6, %v643_v17 }
 0x219   :  { %v841_v22 = vadd.f32 %v840_v4, %v792_v8 }
 0x21a   :  { %v843_v10 = vpop.f32.mrf.mxu2 }
 0x21b   :  { %v870_v11 = vmax.f32 %v841_v22, 0.0 }
 0x21d   :  { %v890_v27 = vpack.c.bf16 %v870_v11, %v869_v33  ;;  %v916_v11 = vpop.permute.xlu1 %915 }
 0x21e   :  { %v794_v12 = vpop.f32.mrf.mxu1 }
 0x21f   :  { %v795_v13 = vadd.f32 %v794_v12, %v648_v58 }
 0x221   :  { %v844_v50 = vadd.f32 %v843_v10, %v795_v13  ;;  %v926_v10 = vpop.permute.xlu2 %925 }
 0x222   :  { %v845_v40 = vpop.f32.mrf.mxu2 }
 0x223   :  { %v871_v60 = vmax.f32 %v844_v50, 0.0 }
 0x226   :  { %v796_v19 = vpop.f32.mrf.mxu1 }
 0x229   :  { %v921_v13 = vpop.permute.xlu2 %920 }
 0x22a   :  { %v848_v20 = vpop.f32.mrf.mxu2 }
 0x22e   :  { %v799_v51 = vpop.f32.mrf.mxu1 }
 0x22f   :  { %v800_v31 = vadd.f32 %v799_v51, %v1813_v63 }
 0x231   :  { %v849_v42 = vadd.f32 %v848_v20, %v800_v31 }
 0x232   :  { %v850_v18 = vpop.f32.mrf.mxu2 }
 0x236   :  { %v801_v24 = vpop.f32.mrf.mxu1 }
 0x237   :  { %v802_v15 = vadd.f32 %v801_v24, %v1797_v9  ;;  %v873_v9 = vmax.f32 %v849_v42, 0.0  ;;  %v911_v24 = vpop.permute.xlu1 %910 }
 0x239   :  { %v851_v38 = vadd.f32 %v850_v18, %v802_v15 }
 0x23a   :  { %v853_v59 = vpop.f32.mrf.mxu2 }
 0x23b   :  { %v874_v43 = vmax.f32 %v851_v38, 0.0 }
 0x23d   :  { %v892_v63 = vpack.c.bf16 %v874_v43, %v873_v9 }
 0x23e   :  { %v804_v34 = vpop.f32.mrf.mxu1 }
 0x23f   :  { %v805_v58 = vadd.f32 %v804_v34, %v1787_v48 }
 0x241   :  { %v854_v54 = vadd.f32 %v853_v59, %v805_v58 }
 0x242   :  { %v855_v1 = vpop.f32.mrf.mxu2 }
 0x243   :  { %v875_v48 = vmax.f32 %v854_v54, 0.0 }
 0x246   :  { %v806_v16 = vpop.f32.mrf.mxu1 }
 0x247   :  { %v807_v25 = vadd.f32 %v806_v16, %v1795_v47 }
 0x249   :  { %v856_v30 = vadd.f32 %v855_v1, %v807_v25 }
 0x24a   :  { %v858_v23 = vpop.f32.mrf.mxu2 }
 0x24b   :  { %v876_v47 = vmax.f32 %v856_v30, 0.0 }
 0x24d   :  { %v893_v52 = vpack.c.bf16 %v876_v47, %v875_v48 }
 0x24e   :  { %v809_v17 = vpop.f32.mrf.mxu1 }
 0x24f   :  { %v810_v45 = vadd.f32 %v809_v17, %v1785_v7  ;;  %v797_v7 = vadd.f32 %v796_v19, %v1815_v57  ;;  %v1238_v57 = vld [vmem:[%s1862_s5] sm:$0xff] }
 0x251   :  { %v859_v0 = vadd.f32 %v858_v23, %v810_v45 }
 0x252   :  { %v860_v28 = vpop.f32.mrf.mxu2 }
 0x253   :  { %v877_v32 = vmax.f32 %v859_v0, 0.0  ;;  %v1004_v0 = vld [vmem:[%s1864_s7] sm:$0x1] }
 0x256   :  { %v811_v14 = vpop.f32.mrf.mxu1 }
 0x257   :  { %v812_v37 = vadd.f32 %v811_v14, %v1811_v56  ;;  %v846_v56 = vadd.f32 %v845_v40, %v797_v7 }
 0x259   :  { %v861_v55 = vadd.f32 %v860_v28, %v812_v37  ;;  %v872_v53 = vmax.f32 %v846_v56, 0.0  ;;  %v1010_v37 = vstv %s1865_s8 }
 0x25b   :  { %v878_v35 = vmax.f32 %v861_v55, 0.0  ;;  %v891_v21 = vpack.c.bf16 %v872_v53, %v871_v60 }
 0x25d   :  { %v894_v41 = vpack.c.bf16 %v878_v35, %v877_v32 }
 0x25f   :  { %967 = vmatpush.bf16.msrb.mxu1 %v894_v41  ;;  %1250 = vmatpush.bf16.msrb.mxu3 %v894_v41 }
 0x263   :  { %968 = vmatpush.bf16.msrb.mxu1 %v893_v52  ;;  %1251 = vmatpush.bf16.msrb.mxu3 %v893_v52 }
 0x267   :  { %969 = vmatpush.bf16.msrb.mxu1 %v892_v63  ;;  %1252 = vmatpush.bf16.msrb.mxu3 %v892_v63 }
 0x26b   :  { %970 = vmatpush.bf16.msrb.mxu1 %v891_v21  ;;  %1253 = vmatpush.bf16.msrb.mxu3 %v891_v21 }
 0x26f   :  { %971 = vmatpush.bf16.msrb.mxu1 %v890_v27  ;;  %1254 = vmatpush.bf16.msrb.mxu3 %v890_v27  ;;  %v931_v27 = vpop.permute.xlu0 %930 }
 0x273   :  { %972 = vmatpush.bf16.msrb.mxu1 %v1821_v3  ;;  %1255 = vmatpush.bf16.msrb.mxu3 %v1821_v3 }
 0x277   :  { %973 = vmatpush.bf16.msrb.mxu1 %v1819_v44  ;;  %1256 = vmatpush.bf16.msrb.mxu3 %v1819_v44  ;;  %v1240_v44 = vld [vmem:[%s1862_s5 + $0x10] sm:$0xff]  ;;  %v906_v16 = vpop.permute.xlu0 %905 }
 0x27b   :  { %974 = vmatpush.bf16.msrb.mxu1 %v1817_v29  ;;  %1257 = vmatpush.bf16.msrb.mxu3 %v1817_v29 }
 0x27e   :  { %975 = vmatmul.bf16.vlgmr.msrb.gmra.mxu1 %v1238_v57  ;;  %990 = vmatmul.bf16.vlgmr.msrb.gmra.mxu3 %v1241_v61 }
 0x28e   :  { %980 = vmatmul.bf16.gmra.mxu1 %v1239_v46 }
 0x29e   :  { %985 = vmatmul.bf16.gmra.mxu1 %v1240_v44 }
 0x2fb   :  { %v976_v62 = vpop.f32.mrf.mxu1 }
 0x2fc   :  { %v977_v23 = vadd.f32 %v976_v62, %v906_v16 }
 0x2fe   :  { %v996_v14 = vmax.f32 %v977_v23, 0.0 }
 0x301   :  { %v991_v26 = vpop.f32.mrf.mxu3 }
 0x302   :  { %v992_v3 = vadd.f32 %v991_v26, %v936_v36 }
 0x303   :  { %v978_v2 = vpop.f32.mrf.mxu1 }
 0x304   :  { %v1002_v4 = vmax.f32 %v992_v3, 0.0  ;;  %v979_v59 = vadd.f32 %v978_v2, %v911_v24 }
 0x306   :  { %v997_v45 = vmax.f32 %v979_v59, 0.0 }
 0x308   :  { %v1005_v58 = vpack.c.bf16 %v997_v45, %v996_v14 }
 0x309   :  { %v993_v5 = vpop.f32.mrf.mxu3 }
 0x30a   :  { %v994_v29 = vadd.f32 %v993_v5, %v941_v39 }
 0x30b   :  { %v981_v49 = vpop.f32.mrf.mxu1 }
 0x30c   :  { %v1003_v6 = vmax.f32 %v994_v29, 0.0  ;;  %v982_v20 = vadd.f32 %v981_v49, %v916_v11 }
 0x30e   :  { %v1008_v8 = vpack.c.bf16 %v1003_v6, %v1002_v4  ;;  %v998_v17 = vmax.f32 %v982_v20, 0.0 }
 0x310   :  { %1019 = vmatpush.bf16.msra.mxu3 %v1008_v8 }
 0x313   :  { %v983_v22 = vpop.f32.mrf.mxu1 }
 0x314   :  { %v984_v40 = vadd.f32 %v983_v22, %v921_v13 }
 0x316   :  { %v999_v34 = vmax.f32 %v984_v40, 0.0 }
 0x318   :  { %v1006_v25 = vpack.c.bf16 %v999_v34, %v998_v17 }
 0x31b   :  { %v986_v33 = vpop.f32.mrf.mxu1 }
 0x31c   :  { %v987_v12 = vadd.f32 %v986_v33, %v926_v10 }
 0x31e   :  { %v1000_v51 = vmax.f32 %v987_v12, 0.0 }
 0x323   :  { %v988_v50 = vpop.f32.mrf.mxu1 }
 0x324   :  { %v989_v19 = vadd.f32 %v988_v50, %v931_v27 }
 0x326   :  { %v1001_v18 = vmax.f32 %v989_v19, 0.0 }
 0x328   :  { %v1007_v1 = vpack.c.bf16 %v1001_v18, %v1000_v51 }
 0x32a   :  { %1020 = vmatpush.bf16.msra.mxu3 %v1007_v1 }
 0x32e   :  { %1021 = vmatpush.bf16.msra.mxu3 %v1006_v25 }
 0x332   :  { %1022 = vmatpush.bf16.msra.mxu3 %v1005_v58 }
 0x335   :  { %1205 = vmatmul.msk.bf16.vlgmr.msra.gmra.mxu3 %vm1011_vm1, %v1004_v0 }
 0x3b8   :  { %v1024_v28 = vpop.f32.mrf.mxu3 }
 0x3b9   :  { %v1025_v15 = vadd.f32 %v1024_v28, %v1010_v37 }
 0x3bb   :  { %1028 = vst [vmem:[#allocation3] sm:$0x1] %v1025_v15 }
 0x3bc   :  { %1039 = dma.vmem_to_hbm [thread:$0]  %s1035_s25, 16, %s1037_s1, [#allocation4]  }
 0x3c0   :  { %v1026_v30 = vpop.f32.mrf.mxu3 }
 0x3c1   :  { %1287 = dma.done.wait [#allocation4], 16  }
 0x3c2   :  { %1288 = vsyncadd [#allocation4], 4294967280 }
 0x3c3   :  { %1044 = vsyncpa [#allocation4], 1 }

</bundles_post_ra>
